<compile_context>
chip_gen: v6e
topology: v6e:2x2x1
jax: 0.10.0
libtpu: 0.0.40
codegen_flags: <defaults>
</compile_context>

<pallas_src>
import functools

import jax
import jax.numpy as jnp
from jax import lax
from jax.experimental import pallas as pl
from jax.experimental.pallas import tpu as pltpu


def _proto_loss_kernel(ft_ref, muT_ref, out_ref, *, nav_t: float, s_par: float):
    # Operands stay in their native dtype (bf16 inputs feed the MXU as bf16);
    # accumulation and all elementwise / softmax math are f32.
    ft = ft_ref[...]      # (N, D)  target features, native HBM layout
    muT = muT_ref[...]    # (D, C)  prototypes, tiny operand pre-transposed in the wrapper

    # Single MXU matmul: simT = f_t @ mu_s.T   -> (N, C), f32 accumulation.
    simT = jnp.dot(ft, muT, preferred_element_type=jnp.float32)
    scaled = simT * (1.0 / nav_t)

    # One exp shared by both softmaxes (both are shift-invariant; shift by the global max).
    g = jnp.max(jnp.max(scaled, axis=1, keepdims=True), axis=0, keepdims=True)  # (1, 1)
    e = jnp.exp(scaled - g)                                                     # (N, C)

    # Reciprocal L2 norms via EUP rsqrt.  The f32 upcast is inlined inside the reduction
    # expression (f32 accumulation) so no standalone whole-array f32 copy is kept live.
    # rsqrt(max(sumsq, 1e-24)) == 1 / max(norm, 1e-12), matching F.normalize's eps clamp.
    inv_ft = lax.rsqrt(jnp.maximum(
        jnp.sum(jnp.square(ft.astype(jnp.float32)), axis=1, keepdims=True), 1e-24))   # (N, 1)
    inv_mu = lax.rsqrt(jnp.maximum(
        jnp.sum(jnp.square(muT.astype(jnp.float32)), axis=0, keepdims=True), 1e-24))  # (1, C)

    # Fused cost/softmax algebra — cost = 1 - ncos and the softmax distributions are
    # never materialized:
    #   sum_C(cost * real) per sample   = 1 - row_q / row_e    (real = softmax over C)
    #   sum_N(cost * fake) per prototype= 1 - col_q / col_e    (fake = softmax over N)
    ncos = simT * inv_ft * inv_mu     # (N, C) pairwise cosine similarity
    q = ncos * e                      # (N, C)

    row_e = jnp.sum(e, axis=1, keepdims=True)   # (N, 1)  sums over prototypes (C)
    row_q = jnp.sum(q, axis=1, keepdims=True)   # (N, 1)
    col_e = jnp.sum(e, axis=0, keepdims=True)   # (1, C)  sums over samples (N)
    col_q = jnp.sum(q, axis=0, keepdims=True)   # (1, C)

    # Guard: under the shared global-max shift an entire row/column of e can underflow to
    # zero; exact reciprocal of 0 would give inf and 0*inf -> NaN.  The clamp is exact
    # whenever the denominator is nonzero.  (Fully robust alternative: per-axis max
    # shifts, at the cost of a second exp.)
    tiny = jnp.float32(1e-30)
    source_loss = s_par * (1.0 - jnp.mean(row_q * pl.reciprocal(jnp.maximum(row_e, tiny))))
    target_loss = (1.0 - s_par) * (1.0 - jnp.mean(col_q * pl.reciprocal(jnp.maximum(col_e, tiny))))

    # Reduce-to-scalar result goes out through SMEM.
    out_ref[0, 0] = source_loss + target_loss


def proto_loss(mu_s, f_t, nav_t: float = 1.0, s_par: float = 0.5):
    """ProtoLoss.forward. mu_s: (C, D) prototypes, f_t: (N, D) target features."""
    kernel = functools.partial(_proto_loss_kernel, nav_t=float(nav_t), s_par=float(s_par))
    # Only the tiny operand is transposed host-side; the big (N, D) f_t is handed to the
    # kernel in its native layout (no extra HBM read+write transpose pass at production N).
    muT = mu_s.T  # (D, C)
    out = pl.pallas_call(
        kernel,
        out_shape=jax.ShapeDtypeStruct((1, 1), jnp.float32),
        in_specs=[
            pl.BlockSpec(memory_space=pltpu.MemorySpace.VMEM),  # f_t  (N, D)
            pl.BlockSpec(memory_space=pltpu.MemorySpace.VMEM),  # mu^T (D, C)
        ],
        out_specs=pl.BlockSpec(memory_space=pltpu.MemorySpace.SMEM),
    )(f_t, muT)
    return out[0, 0]


def _proto_loss_ref(mu_s, f_t, nav_t: float, s_par: float):
    """Pure-JAX reference mirroring the PyTorch module, for a correctness check."""
    mu = mu_s.astype(jnp.float32)
    ft = f_t.astype(jnp.float32)
    sim = mu @ ft.T
    real = jax.nn.softmax(sim / nav_t, axis=0)
    fake = jax.nn.softmax(sim / nav_t, axis=1)
    mu_n = mu / jnp.maximum(jnp.linalg.norm(mu, axis=1, keepdims=True), 1e-12)
    ft_n = ft / jnp.maximum(jnp.linalg.norm(ft, axis=1, keepdims=True), 1e-12)
    cost = 1.0 - mu_n @ ft_n.T
    source_loss = jnp.mean(jnp.sum(s_par * cost * real, axis=0))
    target_loss = jnp.mean(jnp.sum((1.0 - s_par) * cost * fake, axis=1))
    return source_loss + target_loss


if __name__ == "__main__":
    key = jax.random.PRNGKey(0)
    k_mu, k_ft = jax.random.split(key)

    C, N, D = 8, 16, 32  # prototypes, target samples, feature dim
    nav_t, s_par = 0.5, 0.5

    mu_s = jax.random.normal(k_mu, (C, D), dtype=jnp.float32)
    f_t = jax.random.normal(k_ft, (N, D), dtype=jnp.float32)

    loss = proto_loss(mu_s, f_t, nav_t=nav_t, s_par=s_par)
    loss = jax.block_until_ready(loss)

    ref = _proto_loss_ref(mu_s, f_t, nav_t, s_par)
    assert jnp.allclose(loss, ref, atol=1e-5, rtol=1e-5), (loss, ref)

    print("KERNEL_OK")
</pallas_src>

<mosaic_0001>
module attributes {stable_mosaic.version = 11 : i64} {
  func.func @_proto_loss_kernel(%arg0: memref<16x32xf32, #tpu.memory_space<vmem>>, %arg1: memref<32x8xf32, #tpu.memory_space<vmem>>, %arg2: memref<1x1xf32, #tpu.memory_space<smem>>) attributes {dimension_semantics = [], scalar_prefetch = 0 : i64, scratch_operands = 0 : i64, tpu.core_type = #tpu.core_type<tc>} {
    %c0 = arith.constant 0 : index
    %c0_0 = arith.constant 0 : index
    %0 = vector.load %arg0[%c0, %c0_0] : memref<16x32xf32, #tpu.memory_space<vmem>>, vector<16x32xf32>
    %c0_1 = arith.constant 0 : index
    %c0_2 = arith.constant 0 : index
    %1 = vector.load %arg1[%c0_1, %c0_2] : memref<32x8xf32, #tpu.memory_space<vmem>>, vector<32x8xf32>
    %cst = arith.constant dense<0.000000e+00> : vector<16x8xf32>
    %2 = tpu.matmul %0, %1, %cst {dimension_numbers = #tpu.dot_dimension_numbers<[1], [0], [0], [1], [0, 0, 1, 1], [], []>} : vector<16x32xf32>, vector<32x8xf32>, vector<16x8xf32> -> vector<16x8xf32>
    %cst_3 = arith.constant 2.000000e+00 : f32
    %3 = vector.broadcast %cst_3 : f32 to vector<16x8xf32>
    %4 = arith.mulf %2, %3 : vector<16x8xf32>
    %cst_4 = arith.constant dense<0xFF800000> : vector<16xf32>
    %5 = vector.multi_reduction <maximumf>, %4, %cst_4 [1] : vector<16x8xf32> to vector<16xf32>
    %6 = vector.shape_cast %5 : vector<16xf32> to vector<16x1xf32>
    %cst_5 = arith.constant dense<0xFF800000> : vector<1xf32>
    %7 = vector.multi_reduction <maximumf>, %6, %cst_5 [0] : vector<16x1xf32> to vector<1xf32>
    %8 = vector.shape_cast %7 : vector<1xf32> to vector<1x1xf32>
    %9 = vector.broadcast %8 : vector<1x1xf32> to vector<16x8xf32>
    %10 = arith.subf %4, %9 : vector<16x8xf32>
    %11 = math.exp %10 : vector<16x8xf32>
    %12 = arith.mulf %0, %0 : vector<16x32xf32>
    %cst_6 = arith.constant dense<0.000000e+00> : vector<16xf32>
    %13 = vector.multi_reduction <add>, %12, %cst_6 [1] : vector<16x32xf32> to vector<16xf32>
    %14 = vector.shape_cast %13 : vector<16xf32> to vector<16x1xf32>
    %cst_7 = arith.constant 1.000000e-24 : f32
    %15 = vector.broadcast %cst_7 : f32 to vector<16x1xf32>
    %16 = arith.maximumf %14, %15 : vector<16x1xf32>
    %17 = math.rsqrt %16 : vector<16x1xf32>
    %18 = arith.mulf %1, %1 : vector<32x8xf32>
    %cst_8 = arith.constant dense<0.000000e+00> : vector<8xf32>
    %19 = vector.multi_reduction <add>, %18, %cst_8 [0] : vector<32x8xf32> to vector<8xf32>
    %20 = vector.shape_cast %19 : vector<8xf32> to vector<1x8xf32>
    %cst_9 = arith.constant 1.000000e-24 : f32
    %21 = vector.broadcast %cst_9 : f32 to vector<1x8xf32>
    %22 = arith.maximumf %20, %21 : vector<1x8xf32>
    %23 = math.rsqrt %22 : vector<1x8xf32>
    %24 = vector.broadcast %17 : vector<16x1xf32> to vector<16x8xf32>
    %25 = arith.mulf %2, %24 : vector<16x8xf32>
    %26 = vector.broadcast %23 : vector<1x8xf32> to vector<16x8xf32>
    %27 = arith.mulf %25, %26 : vector<16x8xf32>
    %28 = arith.mulf %27, %11 : vector<16x8xf32>
    %cst_10 = arith.constant dense<0.000000e+00> : vector<16xf32>
    %29 = vector.multi_reduction <add>, %11, %cst_10 [1] : vector<16x8xf32> to vector<16xf32>
    %30 = vector.shape_cast %29 : vector<16xf32> to vector<16x1xf32>
    %cst_11 = arith.constant dense<0.000000e+00> : vector<16xf32>
    %31 = vector.multi_reduction <add>, %28, %cst_11 [1] : vector<16x8xf32> to vector<16xf32>
    %32 = vector.shape_cast %31 : vector<16xf32> to vector<16x1xf32>
    %cst_12 = arith.constant dense<0.000000e+00> : vector<8xf32>
    %33 = vector.multi_reduction <add>, %11, %cst_12 [0] : vector<16x8xf32> to vector<8xf32>
    %34 = vector.shape_cast %33 : vector<8xf32> to vector<1x8xf32>
    %cst_13 = arith.constant dense<0.000000e+00> : vector<8xf32>
    %35 = vector.multi_reduction <add>, %28, %cst_13 [0] : vector<16x8xf32> to vector<8xf32>
    %36 = vector.shape_cast %35 : vector<8xf32> to vector<1x8xf32>
    %cst_14 = arith.constant 1.000000e-30 : f32
    %37 = vector.broadcast %cst_14 : f32 to vector<16x1xf32>
    %38 = arith.maximumf %30, %37 : vector<16x1xf32>
    %39 = tpu.reciprocal %38 : vector<16x1xf32> -> vector<16x1xf32>
    %40 = arith.mulf %32, %39 : vector<16x1xf32>
    %41 = vector.shape_cast %40 : vector<16x1xf32> to vector<1x16x1xf32>
    %cst_15 = arith.constant dense<0.000000e+00> : vector<1xf32>
    %42 = vector.multi_reduction <add>, %41, %cst_15 [1, 2] : vector<1x16x1xf32> to vector<1xf32>
    %43 = vector.shape_cast %42 : vector<1xf32> to vector<1x1x1xf32>
    %44 = vector.extract %43[0, 0, 0] : f32 from vector<1x1x1xf32>
    %cst_16 = arith.constant 1.600000e+01 : f32
    %45 = arith.divf %44, %cst_16 : f32
    %cst_17 = arith.constant 1.000000e+00 : f32
    %46 = arith.subf %cst_17, %45 : f32
    %cst_18 = arith.constant 5.000000e-01 : f32
    %47 = arith.mulf %cst_18, %46 : f32
    %cst_19 = arith.constant 1.000000e-30 : f32
    %48 = vector.broadcast %cst_19 : f32 to vector<1x8xf32>
    %49 = arith.maximumf %34, %48 : vector<1x8xf32>
    %50 = tpu.reciprocal %49 : vector<1x8xf32> -> vector<1x8xf32>
    %51 = arith.mulf %36, %50 : vector<1x8xf32>
    %52 = vector.shape_cast %51 : vector<1x8xf32> to vector<1x1x8xf32>
    %cst_20 = arith.constant dense<0.000000e+00> : vector<1xf32>
    %53 = vector.multi_reduction <add>, %52, %cst_20 [1, 2] : vector<1x1x8xf32> to vector<1xf32>
    %54 = vector.shape_cast %53 : vector<1xf32> to vector<1x1x1xf32>
    %55 = vector.extract %54[0, 0, 0] : f32 from vector<1x1x1xf32>
    %cst_21 = arith.constant 8.000000e+00 : f32
    %56 = arith.divf %55, %cst_21 : f32
    %cst_22 = arith.constant 1.000000e+00 : f32
    %57 = arith.subf %cst_22, %56 : f32
    %cst_23 = arith.constant 5.000000e-01 : f32
    %58 = arith.mulf %cst_23, %57 : f32
    %59 = arith.addf %47, %58 : f32
    %c0_24 = arith.constant 0 : index
    %c0_25 = arith.constant 0 : index
    %60 = memref.load %arg2[%c0_24, %c0_25] : memref<1x1xf32, #tpu.memory_space<smem>>
    memref.store %59, %arg2[%c0_24, %c0_25] : memref<1x1xf32, #tpu.memory_space<smem>>
    return
  }
}

</mosaic_0001>

<bundles_post_ra>
// kernel: tpu_custom_call.1
= control target key start
LH: loop header
LB: loop body
LE: loop exit
PB: predicated region body
PF: predicated region fallthrough
CT: control target
= control target key end

     0   :  { %vm102_vm0 = vcmask 64512   ;;  %vm18_vm1 = vcmask 261120   ;;  %s345_s0 = inlined_call_operand.vmem [shape: f32[16,32], index: 0, kind: input, shape index: {}]   ;;  %s346_s1 = inlined_call_operand.vmem [shape: f32[32,8], index: 1, kind: input, shape index: {}]   ;;  %s347_s2 = inlined_call_operand.hbm [shape: f32[1,1], index: 2, kind: output, shape index: {}]  }
   0x1   :  { %v17_v0 = vld [vmem:[%s346_s1 + $0x18] sm:$0xff]  ;;  %v16_v1 = vld [vmem:[%s346_s1 + $0x10] sm:$0xff]  ;;  %v15_v2 = vld [vmem:[%s346_s1 + $0x8] sm:$0xff] }
   0x2   :  { %252 = vmatprep.subr.mxu0 %v17_v0  ;;  %v137_v3 = vmul.f32 %v17_v0, %v17_v0  ;;  %v136_v4 = vmul.f32 %v16_v1, %v16_v1  ;;  %v135_v5 = vmul.f32 %v15_v2, %v15_v2  ;;  %v14_v6 = vld [vmem:[%s346_s1] sm:$0xff]  ;;  %v13_v8 = vld [vmem:[%s345_s0 + $0x8] sm:$0xff] }
   0x3   :  { %v12_v7 = vld [vmem:[%s345_s0] sm:$0xff]  ;;  %253 = vmatpush3.msra.mxu0 %v17_v0  ;;  %v134_v9 = vmul.f32 %v14_v6, %v14_v6  ;;  %v123_v11 = vmul.f32 %v13_v8, %v13_v8 }
   0x4   :  { %260 = vmatprep.mubr.msk.f32.mxu0 %vm18_vm1, %v12_v7  ;;  %v122_v10 = vmul.f32 %v12_v7, %v12_v7 }
   0x5   :  { %7 = vsyncpa [#allocation3], 0  ;;  %254 = vmatprep.subr.mxu0 %v16_v1  ;;  %v139_v12 = vsel %vm102_vm0, %v135_v5, 0.0  ;;  %v141_v13 = vsel %vm102_vm0, %v136_v4, 0.0  ;;  %v138_v14 = vsel %vm102_vm0, %v134_v9, 0.0  ;;  %v143_v17 = vsel %vm102_vm0, %v137_v3, 0.0 }
   0x6   :  { %255 = vmatpush3.msra.mxu0 %v16_v1  ;;  %v124_v15 = vsel %vm18_vm1, %v122_v10, 0.0  ;;  %v140_v16 = vadd.f32 %v139_v12, %v138_v14  ;;  %v127_v18 = vsel %vm18_vm1, %v123_v11, 0.0  ;;  %vm212_vm2 = vcmask 57344   ;;  %s294_s28 = smov [#allocation2]  }
   0x7   :  { %256 = vmatprep.subr.mxu0 %v15_v2  ;;  %125 = vadd.xlane.f32.xlu1 %v124_v15  ;;  %vm191_vm3 = vcmask 7168  }
   0x8   :  { %257 = vmatpush3.msra.mxu0 %v15_v2  ;;  %v142_v19 = vadd.f32 %v141_v13, %v140_v16 }
   0x9   :  { %258 = vmatprep.subr.mxu0 %v14_v6 }
   0xa   :  { %259 = vmatpush3.msra.mxu0 %v14_v6  ;;  %v144_v20 = vadd.f32 %v143_v17, %v142_v19 }
   0xb   :  { %261 = vmatmul.mubr.msk.f32.vlgmr.msra.gmra.mxu0 %vm18_vm1, %v13_v8  ;;  %128 = vadd.xlane.f32.xlu1 %v127_v18 }
   0xc   :  { %v145_v21 = vrot.slane %v144_v20, 4 }
   0xe   :  { %v146_v22 = vadd.f32 %v145_v21, %v144_v20 }
  0x10   :  { %v147_v23 = vrot.slane %v146_v22, 2 }
  0x12   :  { %v148_v24 = vadd.f32 %v147_v23, %v146_v22 }
  0x14   :  { %v149_v26 = vrot.slane %v148_v24, 1 }
  0x16   :  { %v150_v27 = vadd.f32 %v149_v26, %v148_v24 }
  0x18   :  { %v151_v30 = vmax.f32 %v150_v27, 1e-24 }
  0x90   :  { %v126_v25 = vpop.xlane.xlu1 %125 }
  0x91   :  { %v130_v31 = vmax.f32 %v126_v25, 1e-24 }
  0x94   :  { %v129_v28 = vpop.xlane.xlu1 %128 }
  0x95   :  { %v131_v29 = vmax.f32 %v129_v28, 1e-24 }
  0x97   :  { %268 = vrsqrt.f32 %v131_v29 }
  0x98   :  { %270 = vrsqrt.f32 %v151_v30 }
  0x99   :  { %272 = vrsqrt.f32 %v130_v31 }
  0xa4   :  { %v269_v32 = vpop.eup %268 }
  0xa5   :  { %v271_v33 = vpop.eup %270 }
  0xa6   :  { %v273_v34 = vpop.eup %272 }
  0xcb   :  { %v262_v35 = vpop.f32.mrf.mxu0 }
  0xcc   :  { %v154_v36 = vmul.f32 %v269_v32, %v262_v35  ;;  %v101_v41 = vmul.f32 2.0, %v262_v35 }
  0xcd   :  { %v91_v37 = vpop.f32.mrf.mxu0 }
  0xce   :  { %v156_v38 = vmul.f32 %v271_v33, %v154_v36  ;;  %v100_v39 = vmul.f32 2.0, %v91_v37  ;;  %v153_v40 = vmul.f32 %v273_v34, %v91_v37  ;;  %v106_v44 = vsel %vm102_vm0, %v101_v41, -inf }
  0xd0   :  { %v155_v42 = vmul.f32 %v271_v33, %v153_v40  ;;  %v103_v43 = vsel %vm102_vm0, %v100_v39, -inf }
  0xd1   :  { %104 = vmax.xlane.f32.xlu0 %v103_v43 }
  0xd5   :  { %107 = vmax.xlane.f32.xlu0 %v106_v44 }
 0x15a   :  { %v105_v45 = vpop.xlane.xlu0 %104 }
 0x15e   :  { %v108_v46 = vpop.xlane.xlu0 %107 }
 0x15f   :  { %v109_v47 = vmax.f32 %v105_v45, %v108_v46 }
 0x161   :  { %v110_v48 = vrot.slane %v109_v47, 4 }
 0x163   :  { %v111_v49 = vmax.f32 %v109_v47, %v110_v48 }
 0x165   :  { %v112_v50 = vrot.slane %v111_v49, 2 }
 0x167   :  { %v113_v51 = vmax.f32 %v111_v49, %v112_v50 }
 0x169   :  { %v114_v52 = vrot.slane %v113_v51, 1 }
 0x16b   :  { %v115_v53 = vmax.f32 %v113_v51, %v114_v52 }
 0x16d   :  { %v116_v54 = vsub.f32 %v100_v39, %v115_v53  ;;  %v117_v55 = vsub.f32 %v101_v41, %v115_v53 }
 0x16f   :  { %v118_v56 = vmul.f32 1.442695, %v116_v54  ;;  %v120_v57 = vmul.f32 1.442695, %v117_v55 }
 0x171   :  { %274 = vpow2.f32 %v118_v56 }
 0x172   :  { %276 = vpow2.f32 %v120_v57 }
 0x17e   :  { %v275_v58 = vpop.eup %274 }
 0x17f   :  { %v277_v59 = vpop.eup %276  ;;  %v159_v60 = vsel %vm102_vm0, %v275_v58, 0.0  ;;  %v157_v61 = vmul.f32 %v275_v58, %v155_v42 }
 0x180   :  { %v162_v62 = vsel %vm102_vm0, %v277_v59, 0.0  ;;  %160 = vadd.xlane.f32.xlu0 %v159_v60  ;;  %v158_v63 = vmul.f32 %v277_v59, %v156_v38 }
 0x181   :  { %163 = vadd.xlane.f32.xlu1 %v162_v62  ;;  %v171_v0 = vadd.f32 %v162_v62, %v159_v60  ;;  %v165_v1 = vsel %vm102_vm0, %v157_v61, 0.0 }
 0x182   :  { %v168_v2 = vsel %vm102_vm0, %v158_v63, 0.0 }
 0x183   :  { %v172_v3 = vrot.slane %v171_v0, 4  ;;  %v178_v4 = vadd.f32 %v168_v2, %v165_v1 }
 0x184   :  { %166 = vadd.xlane.f32.xlu0 %v165_v1 }
 0x185   :  { %v173_v5 = vadd.f32 %v172_v3, %v171_v0  ;;  %169 = vadd.xlane.f32.xlu1 %v168_v2  ;;  %v179_v8 = vrot.slane %v178_v4, 4 }
 0x187   :  { %v174_v6 = vrot.slane %v173_v5, 2  ;;  %v180_v11 = vadd.f32 %v179_v8, %v178_v4 }
 0x189   :  { %v175_v7 = vadd.f32 %v174_v6, %v173_v5  ;;  %v181_v13 = vrot.slane %v180_v11, 2 }
 0x18b   :  { %v176_v9 = vrot.slane %v175_v7, 1  ;;  %v182_v14 = vadd.f32 %v181_v13, %v180_v11 }
 0x18d   :  { %v177_v10 = vadd.f32 %v176_v9, %v175_v7  ;;  %v183_v15 = vrot.slane %v182_v14, 1 }
 0x18f   :  { %v209_v12 = vmax.f32 %v177_v10, 1e-30  ;;  %v184_v16 = vadd.f32 %v183_v15, %v182_v14 }
 0x191   :  { %278 = vrcp.f32 %v209_v12 }
 0x19e   :  { %v279_v17 = vpop.eup %278 }
 0x19f   :  { %v211_v18 = vmul.f32 %v279_v17, %v184_v16 }
 0x1a1   :  { %v213_v19 = vsel %vm212_vm2, %v211_v18, 0.0 }
 0x1a2   :  { %214 = vadd.xlane.f32.xlu1 %v213_v19 }
 0x209   :  { %v161_v20 = vpop.xlane.xlu0 %160 }
 0x20a   :  { %v164_v21 = vpop.xlane.xlu1 %163  ;;  %v185_v22 = vmax.f32 %v161_v20, 1e-30 }
 0x20b   :  { %v186_v23 = vmax.f32 %v164_v21, 1e-30 }
 0x20c   :  { %280 = vrcp.f32 %v185_v22 }
 0x20d   :  { %282 = vrcp.f32 %v186_v23  ;;  %v167_v25 = vpop.xlane.xlu0 %166 }
 0x20e   :  { %v170_v27 = vpop.xlane.xlu1 %169 }
 0x219   :  { %v281_v24 = vpop.eup %280 }
 0x21a   :  { %v283_v26 = vpop.eup %282  ;;  %v189_v28 = vmul.f32 %v281_v24, %v167_v25 }
 0x21b   :  { %v190_v29 = vmul.f32 %v283_v26, %v170_v27 }
 0x21c   :  { %v192_v30 = vsel %vm191_vm3, %v189_v28, 0.0 }
 0x21d   :  { %v193_v31 = vsel %vm191_vm3, %v190_v29, 0.0 }
 0x21e   :  { %v194_v32 = vadd.f32 %v193_v31, %v192_v30 }
 0x220   :  { %195 = vadd.xlane.f32.xlu0 %v194_v32 }
 0x22b   :  { %v215_v33 = vpop.xlane.xlu1 %214 }
 0x22c   :  { %v216_v34 = vrot.slane %v215_v33, 4 }
 0x22e   :  { %v217_v35 = vadd.f32 %v216_v34, %v215_v33 }
 0x230   :  { %v218_v36 = vrot.slane %v217_v35, 2 }
 0x232   :  { %v219_v40 = vadd.f32 %v218_v36, %v217_v35 }
 0x234   :  { %v220_v43 = vrot.slane %v219_v40, 1 }
 0x236   :  { %v221_v46 = vadd.f32 %v220_v43, %v219_v40 }
 0x2a9   :  { %v196_v37 = vpop.xlane.xlu0 %195 }
 0x2aa   :  { %v197_v38 = vrot.slane %v196_v37, 4 }
 0x2ac   :  { %v198_v39 = vadd.f32 %v197_v38, %v196_v37 }
 0x2ae   :  { %v199_v41 = vrot.slane %v198_v39, 2 }
 0x2b0   :  { %v200_v42 = vadd.f32 %v199_v41, %v198_v39 }
 0x2b2   :  { %v201_v44 = vrot.slane %v200_v42, 1 }
 0x2b4   :  { %v202_v45 = vadd.f32 %v201_v44, %v200_v42 }
 0x2b6   :  { %263 = vpush %v202_v45 }
 0x2b7   :  { %265 = vpush %v221_v46 }
 0x2e7   :  { %s264_s0 = spop %263 }
 0x2e8   :  { %s206_s1 = smul.f32 0.0625, %s264_s0  ;;  %s266_s21 = spop %265 }
 0x2e9   :  { %s225_s22 = smul.f32 0.125, %s266_s21 }
 0x2ea   :  { %s207_s23 = ssub.f32 1.0, %s206_s1 }
 0x2eb   :  { %s226_s24 = ssub.f32 1.0, %s225_s22 }
 0x2ec   :  { %s208_s25 = smul.f32 0.5, %s207_s23 }
 0x2ed   :  { %s227_s26 = smul.f32 0.5, %s226_s24 }
 0x2ef   :  { %s228_s27 = sadd.f32 %s227_s26, %s208_s25 }
 0x2f1   :  { %230 = sst [smem:[#allocation2]] %s228_s27 }
 0x2f2   :  { %238 = dma.smem_to_hbm %s294_s28, 16, %s347_s2, [#allocation3]  }
 0x2f3   :  { %292 = dma.done.wait [#allocation3], 16  }
 0x2f4   :  { %293 = vsyncadd [#allocation3], 4294967280 }
 0x2f5   :  { %242 = sfence }
 0x2f6   :  { %243 = vsyncpa [#allocation3], 1 }

</bundles_post_ra>
